<compile_context>
chip_gen: v5e
topology: v5e:2x2
jax: 0.10.0
libtpu: 0.0.40
codegen_flags: <defaults>
</compile_context>

<pallas_src>
import jax
import jax.numpy as jnp
from jax.experimental import pallas as pl
from jax.experimental.pallas import tpu as pltpu


def _round_up(x, m):
    return (x + m - 1) // m * m


def _proj_kernel(x_ref, w_ref, b_ref, o_ref):
    # x_ref: (tm, D) activation rows (f32 or bf16 — whatever the producer emits)
    # w_ref: (D, O)  proj_out weight, VMEM-resident across grid steps
    # b_ref: (1, O)  f32 proj_out bias, VMEM-resident
    # o_ref: (tm, O) f32 output
    #
    # Boundary-safety invariant (pad-free ragged last block): each output row
    # depends ONLY on its own input row, and out-of-bounds output stores are
    # masked by Pallas. Do NOT add cross-row reductions here without
    # reinstating explicit row padding.
    x = x_ref[...]
    if x.dtype != w_ref.dtype:
        x = x.astype(w_ref.dtype)          # in-VMEM cast, no extra HBM pass
    y = jnp.dot(x, w_ref[...], preferred_element_type=jnp.float32)
    o_ref[...] = (y + b_ref[...]).astype(o_ref.dtype)


def _pick_row_tile(M, tm_max):
    """Row-tile selection.

    * M > tm_max : stream big tm_max tiles (grid >= 2 automatically).
    * 16 <= M <= tm_max : split into two blocks so the 1-D "parallel" grid has
      >= 2 steps and v7x's two TensorCores both get work.
    * tiny M : one block, rounded up to the 8-row sublane granule.
    """
    if M > tm_max:
        return tm_max
    if M >= 16:
        return max(8, _round_up(-(-M // 2), 8))
    return _round_up(M, 8)


def prepare_clap_proj_params(w, b, param_dtype=None):
    """Prepare proj_out params ONCE at load time (hoists any dtype cast out of
    the per-call forward). Pass param_dtype=jnp.bfloat16 only if reduced
    precision vs. the f32 nn.Linear is acceptable."""
    if param_dtype is not None and w.dtype != param_dtype:
        w = w.astype(param_dtype)
    return w, b


def clap_proj_out(x, w, b, *, tm_max=1024):
    """proj_out nn.Linear (dim -> output_dim) over flattened rows of x.

    Args:
      x: [..., D]  CLAP text features (f32 or bf16)
      w: [D, O]    proj_out weight (in-dim x out-dim), prepared once
      b: [O]       proj_out bias
    Returns:
      f32 [..., O]
    """
    lead = x.shape[:-1]
    D = x.shape[-1]
    O = w.shape[1]
    M = 1
    for s in lead:
        M *= s
    x2 = x.reshape(M, D)                      # view-style reshape, no HBM copy
    b2 = b.reshape(1, O).astype(jnp.float32)

    tm = _pick_row_tile(M, tm_max)
    grid = (pl.cdiv(M, tm),)

    cost = pl.CostEstimate(
        flops=2 * M * D * O,
        transcendentals=0,
        bytes_accessed=(M * D * x2.dtype.itemsize
                        + D * O * w.dtype.itemsize
                        + O * 4
                        + M * O * 4),
    )

    out = pl.pallas_call(
        _proj_kernel,
        out_shape=jax.ShapeDtypeStruct((M, O), jnp.float32),
        grid_spec=pltpu.PrefetchScalarGridSpec(
            num_scalar_prefetch=0,
            grid=grid,
            in_specs=[
                pl.BlockSpec((tm, D), lambda i: (i, 0)),   # streamed act rows
                pl.BlockSpec((D, O), lambda i: (0, 0)),    # resident weight
                pl.BlockSpec((1, O), lambda i: (0, 0)),    # resident bias
            ],
            out_specs=pl.BlockSpec((tm, O), lambda i: (i, 0)),  # lane-dense O
        ),
        compiler_params=pltpu.CompilerParams(
            dimension_semantics=("parallel",),
            vmem_limit_bytes=32 * 1024 * 1024,  # <= physical on v5e/v6e/v7x
        ),
        cost_estimate=cost,
    )(x2, w, b2)

    return out.reshape(*lead, O)


def clap_text_conditioner_forward(clap_text_out, attention_mask, w, b,
                                  *, use_text_features):
    """Pallas implementation of CLAPTextConditioner.forward tail.

    Args:
      clap_text_out: if use_text_features: [B, L, 768] hidden states
                     else:                 [B, 512]   pooled embedding
      attention_mask: bool [B, L] (only used for the features path)
      w: [dim, output_dim] proj_out weight; b: [output_dim] bias
         (prepare once via prepare_clap_proj_params — no per-call casts here)
    Returns:
      [projected embeddings f32, mask] mirroring the PyTorch module.
    """
    if use_text_features:
        emb = clap_proj_out(clap_text_out, w, b)
        return emb, attention_mask
    else:
        # Pooled path: M = B rows, <1 MFLOP — custom-call fixed cost would
        # dominate, so use XLA's fused dot+bias (text_embedding.unsqueeze(1)).
        emb = (clap_text_out[:, None, :] @ w + b).astype(jnp.float32)
        ones = jnp.ones((clap_text_out.shape[0], 1), jnp.float32)
        return emb, ones


if __name__ == "__main__":
    OUTPUT_DIM = 256
    B = 2
    MAX_LENGTH = 13   # deliberately not a tile multiple -> exercises the
                      # pad-free ragged boundary block (M = 26, tm = 16, grid=2)
    DIM_EMB = 512     # CLAP pooled text embedding dim (use_text_features=False)
    DIM_FEAT = 768    # CLAP text-branch hidden dim    (use_text_features=True)

    key = jax.random.PRNGKey(0)
    k_e, k_f, k_w1, k_b1, k_w2, k_b2 = jax.random.split(key, 6)

    # TODO(synk): laion_clap tokenizer + pretrained text branch have no Pallas
    # equivalent; synthesize their outputs (pooled embedding / hidden states).
    text_embedding = jax.random.normal(k_e, (B, DIM_EMB), dtype=jnp.float32)
    text_embedding = text_embedding / jnp.linalg.norm(
        text_embedding, axis=-1, keepdims=True)          # CLAP L2-normalizes
    text_features = jax.random.normal(
        k_f, (B, MAX_LENGTH, DIM_FEAT), dtype=jnp.float32)
    valid_lens = jnp.array([10, 5], dtype=jnp.int32)
    attention_mask = (
        jnp.arange(MAX_LENGTH)[None, :] < valid_lens[:, None])  # bool [B, L]

    # Deterministic nn.Linear(dim, output_dim) init (uniform +/- 1/sqrt(dim)).
    bnd1 = 1.0 / (DIM_EMB ** 0.5)
    w_emb = jax.random.uniform(k_w1, (DIM_EMB, OUTPUT_DIM), jnp.float32,
                               -bnd1, bnd1)
    b_emb = jax.random.uniform(k_b1, (OUTPUT_DIM,), jnp.float32, -bnd1, bnd1)
    bnd2 = 1.0 / (DIM_FEAT ** 0.5)
    w_feat = jax.random.uniform(k_w2, (DIM_FEAT, OUTPUT_DIM), jnp.float32,
                                -bnd2, bnd2)
    b_feat = jax.random.uniform(k_b2, (OUTPUT_DIM,), jnp.float32, -bnd2, bnd2)

    # Parameters are prepared once (kept f32 for strict nn.Linear parity; the
    # weight is VMEM-resident so its HBM cost is negligible).
    w_emb_p, b_emb_p = prepare_clap_proj_params(w_emb, b_emb)
    w_feat_p, b_feat_p = prepare_clap_proj_params(w_feat, b_feat)

    # --- use_text_features path: per-token hidden states (Pallas kernel) ----
    feat_out, mask_out = clap_text_conditioner_forward(
        text_features, attention_mask, w_feat_p, b_feat_p,
        use_text_features=True)
    jax.block_until_ready(feat_out)
    jax.block_until_ready(mask_out)
    ref_feat = text_features @ w_feat + b_feat   # mask is returned, not applied
    assert feat_out.shape == (B, MAX_LENGTH, OUTPUT_DIM)
    assert feat_out.dtype == jnp.float32
    assert mask_out.dtype == jnp.bool_
    assert jnp.array_equal(mask_out, attention_mask)
    assert jnp.allclose(feat_out, ref_feat, atol=2e-2, rtol=2e-2)

    # --- default path: pooled embedding (XLA fused dot+bias, tiny M) --------
    emb_out, ones_out = clap_text_conditioner_forward(
        text_embedding, None, w_emb_p, b_emb_p, use_text_features=False)
    jax.block_until_ready(emb_out)
    jax.block_until_ready(ones_out)
    ref_emb = text_embedding[:, None, :] @ w_emb + b_emb
    assert emb_out.shape == (B, 1, OUTPUT_DIM)
    assert emb_out.dtype == jnp.float32
    assert ones_out.shape == (B, 1)
    assert jnp.allclose(ones_out, 1.0)
    assert jnp.allclose(emb_out, ref_emb, atol=2e-2, rtol=2e-2)

    print("KERNEL_OK")
</pallas_src>

<mosaic_0001>
module attributes {stable_mosaic.version = 11 : i64} {
  func.func @_proj_kernel(%arg0: i32, %arg1: memref<16x768xf32, #tpu.memory_space<vmem>>, %arg2: memref<768x256xf32, #tpu.memory_space<vmem>>, %arg3: memref<1x256xf32, #tpu.memory_space<vmem>>, %arg4: memref<16x256xf32, #tpu.memory_space<vmem>>) attributes {dimension_semantics = [#tpu.dimension_semantics<parallel>], iteration_bounds = array<i64: 2>, scalar_prefetch = 0 : i64, scratch_operands = 0 : i64, tpu.core_type = #tpu.core_type<tc>, window_params = [{transform_indices = @transform_0, window_bounds = array<i64: 16, 768>}, {pipeline_mode = #tpu.pipeline_mode<synchronous>, transform_indices = @transform_1, window_bounds = array<i64: 768, 256>}, {pipeline_mode = #tpu.pipeline_mode<synchronous>, transform_indices = @transform_2, window_bounds = array<i64: 1, 256>}, {transform_indices = @transform_3, window_bounds = array<i64: 16, 256>}]} {
    %c0 = arith.constant 0 : index
    %c0_0 = arith.constant 0 : index
    %0 = vector.load %arg1[%c0, %c0_0] : memref<16x768xf32, #tpu.memory_space<vmem>>, vector<16x768xf32>
    %c0_1 = arith.constant 0 : index
    %c0_2 = arith.constant 0 : index
    %1 = vector.load %arg2[%c0_1, %c0_2] : memref<768x256xf32, #tpu.memory_space<vmem>>, vector<768x256xf32>
    %cst = arith.constant dense<0.000000e+00> : vector<16x256xf32>
    %2 = tpu.matmul %0, %1, %cst {dimension_numbers = #tpu.dot_dimension_numbers<[1], [0], [0], [1], [0, 0, 1, 1], [], []>} : vector<16x768xf32>, vector<768x256xf32>, vector<16x256xf32> -> vector<16x256xf32>
    %c0_3 = arith.constant 0 : index
    %c0_4 = arith.constant 0 : index
    %3 = vector.load %arg3[%c0_3, %c0_4] : memref<1x256xf32, #tpu.memory_space<vmem>>, vector<1x256xf32>
    %4 = vector.broadcast %3 : vector<1x256xf32> to vector<16x256xf32>
    %5 = arith.addf %2, %4 : vector<16x256xf32>
    %c0_5 = arith.constant 0 : index
    %c0_6 = arith.constant 0 : index
    %6 = vector.load %arg4[%c0_5, %c0_6] : memref<16x256xf32, #tpu.memory_space<vmem>>, vector<16x256xf32>
    tpu.vector_store %arg4[%c0_5, %c0_6], %5 {strides = array<i32>} : memref<16x256xf32, #tpu.memory_space<vmem>>, vector<16x256xf32>,
    return
  }
  func.func @transform_0(%arg0: i32) -> (i32, i32) {
    %c0_i32 = arith.constant 0 : i32
    %c0_i32_0 = arith.constant 0 : i32
    return %arg0, %c0_i32 : i32, i32
  }
  func.func @transform_1(%arg0: i32) -> (i32, i32) {
    %c0_i32 = arith.constant 0 : i32
    %c0_i32_0 = arith.constant 0 : i32
    %c0_i32_1 = arith.constant 0 : i32
    return %c0_i32, %c0_i32_0 : i32, i32
  }
  func.func @transform_2(%arg0: i32) -> (i32, i32) {
    %c0_i32 = arith.constant 0 : i32
    %c0_i32_0 = arith.constant 0 : i32
    %c0_i32_1 = arith.constant 0 : i32
    return %c0_i32, %c0_i32_0 : i32, i32
  }
  func.func @transform_3(%arg0: i32) -> (i32, i32) {
    %c0_i32 = arith.constant 0 : i32
    %c0_i32_0 = arith.constant 0 : i32
    return %arg0, %c0_i32 : i32, i32
  }
}

</mosaic_0001>

<bundles_post_ra>
// kernel: tpu_custom_call.1
= control target key start
LH: loop header
LB: loop body
LE: loop exit
PB: predicated region body
PF: predicated region fallthrough
CT: control target
= control target key end

     0   :  { %8 = vsyncpa [#allocation3], 0  ;;  %s1321_s0 = inlined_call_operand.hbm [shape: f32[26,768], index: 0, kind: input, shape index: {}]   ;;  %s1322_s1 = inlined_call_operand.hbm [shape: f32[768,256], index: 1, kind: input, shape index: {}]   ;;  %s1323_s2 = inlined_call_operand.hbm [shape: f32[1,256], index: 2, kind: input, shape index: {}]   ;;  %s1324_s3 = inlined_call_operand.hbm [shape: f32[26,256], index: 3, kind: output, shape index: {}]  }
   0x1   :  { %10 = vsyncpa [#allocation3 + $0x1], 0 }
   0x2   :  { %11 = vsyncpa [#allocation6], 0 }
   0x3   :  { %12 = vsyncpa [#allocation4], 0 }
   0x4   :  { %14 = vsyncpa [#allocation4 + $0x1], 0  ;;  %s1110_s12 = smov 0   ;;  %s1112_s13 = smov 0  }
   0x5   :  { %s1114_s14 = smov 0   ;;  %s1116_s15 = smov 0  }
   0x6 LB: > { %s1131_s16 = sadd.s32 4294967295, %s1080_s15   ;;  %s824_s17 = sadd.s32 4294967294, %s1080_s15   ;;  %s1080_s15 = sphi %s1116_s15, %s1334_s15   ;;  %s1076_s14 = sphi %s1114_s14, %s1333_s14   ;;  %s1072_s13 = sphi %s1112_s13, %s1332_s13   ;;  %s1068_s12 = sphi %s1110_s12, %s1331_s12  }
   0x7   : > { %p40_p0 = scmp.ne.s32.totalorder %s1072_s13, %s1068_s12  ;;  %p41_p1 = scmp.eq.s32.totalorder %s1131_s16, 0 }
   0x8   : > { %p106_p2 = scmp.eq.s32.totalorder %s1131_s16, 1  ;;  %p112_p3 = scmp.eq.s32.totalorder %s824_s17, 1 }
   0x9   : > { %p1140_p4 = por %p41_p1, %p40_p0  ;;  %p825_p5 = scmp.ge.s32.totalorder %s1080_s15, 1 }
   0xa   : > { %p1145_p6 = por %p112_p3, %p40_p0  ;;  %p119_p7 = scmp.lt.s32.totalorder %s1080_s15, 3 }
   0xb   : > { %s130_s22 = sshll.u32 %s1322_s1, 4  ;;  %s1082_s24 = smov [#allocation5]   ;;  %s131_s22 = int_to_ptr.hbm [resolvable:$true] %s130_s22 }
   0xc   : > { %p1153_p8 = pnand %p825_p5, %p119_p7  ;;  %s132_s25 = sshll.u32 %s1082_s24, 4  ;;  %s133_s25 = int_to_ptr.vmem [resolvable:$true] %s132_s25 }
   0xd   : > { %s145_s28 = sshll.u32 %s1323_s2, 4  ;;  %s1083_s29 = smov 256   ;;  %s146_s28 = int_to_ptr.hbm [resolvable:$true] %s145_s28 }
   0xe   : > { %p859_p9 = pneg %p1153_p8  ;;  %s1084_s30 = smov 16  }
   0xf   : > { %s1085_s4 = smov [#allocation7]   ;;  %s1166_s6 = sadd.s32 1, %s1080_s15  }
  0x10   : > { %p860_p10 = pnand %p859_p9, %p41_p1  ;;  %s147_s5 = sshll.u32 %s1085_s4, 4  ;;  %s148_s5 = int_to_ptr.vmem [resolvable:$true] %s147_s5 }
  0x11   : > { %s27_s7 = sadd.s32 1, %s1076_s14  ;;  %s24_s8 = ssub.s32 %s1080_s15, %s1166_s6 }
  0x12   : > { %862 = dma.hbm_to_vmem [thread:$0]  (!%p860_p10), %s131_s22, 24576, %s133_s25, [#allocation6], %s1083_s29, %s1083_s29, %s1084_s30  }
  0x13   : > { %865 = dma.hbm_to_vmem [thread:$0]  (!%p860_p10), %s146_s28, 32, %s148_s5, [#allocation6]  }
  0x14   : > { %p34_p12 = scmp.ne.s32.totalorder %s1076_s14, %s1072_s13  ;;  %p25_p13 = scmp.eq.s32.totalorder %s24_s8, 0 }
  0x15   : > { %p35_p0 = scmp.eq.s32.totalorder %s1080_s15, 0  ;;  %p876_p5 = scmp.lt.s32.totalorder %s1080_s15, 2 }
  0x16   : > { %p1176_p3 = por %p106_p2, %p34_p12  ;;  %s158_s11 = sand.u32 1, %s1076_s14  }
  0x17   : > { %s1182_s10 = scalar_select %p25_p13, %s1076_s14, %s27_s7  }
  0x18   : > { %p36_p7 = por %p35_p0, %p34_p12  ;;  %s844_s17 = smul.u32 96, %s158_s11 }
  0x19   : > { %s845_s20 = smul.u32 96, %s1080_s15  ;;  %s159_s29 = scalar_lea.sflag [#allocation3], %s158_s11 }
  0x1a   : > { %p1186_p9 = pnand %p876_p5, %p36_p7  ;;  %s162_s26 = scalar_lea.vmem [#allocation2], %s844_s17 }
  0x1b   : > { %s168_s25 = scalar_lea.hbm %s1321_s0, %s845_s20  ;;  %s171_s27 = sshll.u32 %s162_s26, 4  ;;  %s172_s27 = int_to_ptr.vmem [resolvable:$true] %s171_s27 }
  0x1c   : > { %s169_s28 = sshll.u32 %s168_s25, 4  ;;  %p984_p10 = pneg %p1186_p9  ;;  %s170_s28 = int_to_ptr.hbm [resolvable:$true] %s169_s28 }
  0x1d   : > { %s980_s30 = sshra.s32 %s170_s28, 4  ;;  %s987_s8 = scalar_lea.hbm %s1321_s0, 192  ;;  %s981_s30 = int_to_ptr.hbm [resolvable:$true] %s980_s30 }
  0x1e   : > { %s982_s4 = scalar_lea.hbm %s981_s30, 96  ;;  %p988_p0 = scmp.lt.s32.totalorder %s981_s30, %s1321_s0 }
  0x1f   : > { %p983_p2 = scmp.ne.s32.totalorder %s981_s30, %s982_s4  ;;  %p989_p5 = scmp.lt.s32.totalorder %s987_s8, %s982_s4 }
  0x21   : > { %p985_p12 = pnand %p984_p10, %p983_p2  ;;  %p990_p7 = por %p989_p5, %p988_p0 }
  0x23   : > { %p986_p13 = pneg %p985_p12 }
  0x25   : > { %p991_p11 = pnand %p990_p7, %p986_p13 }
  0x27   : > { %994 = shalt.err (!%p991_p11)
}
  0x28   : > { %s1086_s11 = smov 768   ;;  %s1087_s17 = smov 48  }
  0x29   : > { %869 = dma.hbm_to_vmem [thread:$0]  (!%p1186_p9), %s170_s28, 1536, %s172_s27, %s159_s29, %s1086_s11, %s1086_s11, %s1087_s17  }
  0x2a   : > { %183 = sbr.rel (%p1153_p8) target bundleno = 303 (0x12f), region = 32  ;;  %s1206_s24 = sand.u32 (!%p1153_p8), 1, %s1072_s13  }
  0x2b   : > { %s846_s25 = smul.u32 (!%p1153_p8), 96, %s1206_s24  ;;  %s186_s26 = scalar_lea.sflag (!%p1153_p8), [#allocation3], %s1206_s24 }
  0x2d   : > { %s1210_s30 = scalar_lea.vmem (!%p1153_p8), [#allocation2], %s846_s25 }
  0x2f   : > { %1055 = dma.done.wait (%p1140_p4), %s186_s26, 1536  }
  0x30   : > { %1057 = vsyncadd (%p1140_p4), %s186_s26, 4294965760 }
  0x31   : > { %1059 = dma.done.wait (%p41_p1), [#allocation6], 24608  }
  0x32   : > { %1061 = vsyncadd (%p41_p1), [#allocation6], 4294942688  ;;  %v267_v0 = vld [vmem:[#allocation5 + $0xf0] sm:$0xff]  ;;  %v265_v2 = vld [vmem:[#allocation5 + $0xe0] sm:$0xff]  ;;  %s835_s18 = sshll.u32 %s1206_s24, 5  ;;  %s843_s21 = sshll.u32 %s1131_s16, 5 }
  0x33   : > { %v331_v1 = vld [vmem:[#allocation5 + $0x2f0] sm:$0xff]  ;;  %435 = vmatpush.msra.mxu0 %v267_v0  ;;  %v329_v4 = vld [vmem:[#allocation5 + $0x2e0] sm:$0xff]  ;;  %v268_v63 = vld [vmem:[#allocation5 + $0xf8] sm:$0xff]  ;;  %s1281_s23 = scalar_lea.vmem [#allocation8], %s835_s18  ;;  %s728_s29 = scalar_lea.hbm %s1324_s3, %s843_s21 }
  0x34   : > { %481 = vmatpush.msra.mxu2 %v331_v1  ;;  %v299_v3 = vld [vmem:[#allocation5 + $0x1f0] sm:$0xff]  ;;  %v297_v7 = vld [vmem:[#allocation5 + $0x1e0] sm:$0xff]  ;;  %s729_s4 = sshll.u32 %s1281_s23, 4  ;;  %s731_s5 = sshll.u32 %s728_s29, 4  ;;  %s730_s4 = int_to_ptr.vmem [resolvable:$true] %s729_s4  ;;  %s732_s5 = int_to_ptr.hbm [resolvable:$true] %s731_s5 }
  0x35   : > { %v363_v5 = vld [vmem:[#allocation5 + $0x3f0] sm:$0xff]  ;;  %458 = vmatpush.msra.mxu1 %v299_v3  ;;  %436 = vmatpush.msra.mxu0 %v265_v2  ;;  %v361_v9 = vld [vmem:[#allocation5 + $0x3e0] sm:$0xff]  ;;  %s716_s16 = scalar_lea.sflag [#allocation4], %s1206_s24  ;;  %s1024_s7 = sshra.s32 %s732_s5, 4  ;;  %s1025_s7 = int_to_ptr.hbm [resolvable:$true] %s1024_s7 }
  0x36   : > { %504 = vmatpush.msra.mxu3 %v363_v5  ;;  %v263_v6 = vld [vmem:[#allocation5 + $0xd0] sm:$0xff]  ;;  %482 = vmatpush.msra.mxu2 %v329_v4  ;;  %v261_v11 = vld [vmem:[#allocation5 + $0xc0] sm:$0xff]  ;;  %v266_v4 = vld [vmem:[#allocation5 + $0xe8] sm:$0xff]  ;;  %s1026_s8 = scalar_lea.hbm %s1025_s7, 32  ;;  %s1030_s11 = scalar_lea.hbm %s1324_s3, 64 }
  0x37   : > { %v327_v8 = vld [vmem:[#allocation5 + $0x2d0] sm:$0xff]  ;;  %459 = vmatpush.msra.mxu1 %v297_v7  ;;  %v325_v12 = vld [vmem:[#allocation5 + $0x2c0] sm:$0xff]  ;;  %437 = vmatpush.msra.mxu0 %v263_v6  ;;  %v300_v5 = vld [vmem:[#allocation5 + $0x1f8] sm:$0xff]  ;;  %p1027_p1 = scmp.ne.s32.totalorder %s1025_s7, %s1026_s8  ;;  %p1031_p11 = scmp.lt.s32.totalorder %s1025_s7, %s1324_s3 }
  0x38   : > { %v295_v10 = vld [vmem:[#allocation5 + $0x1d0] sm:$0xff]  ;;  %505 = vmatpush.msra.mxu3 %v361_v9  ;;  %483 = vmatpush.msra.mxu2 %v327_v8  ;;  %v293_v14 = vld [vmem:[#allocation5 + $0x1c0] sm:$0xff]  ;;  %v264_v8 = vld [vmem:[#allocation5 + $0xd8] sm:$0xff]  ;;  %p1032_p9 = scmp.lt.s32.totalorder %s1030_s11, %s1026_s8 }
  0x39   : > { %v359_v13 = vld [vmem:[#allocation5 + $0x3d0] sm:$0xff]  ;;  %v357_v15 = vld [vmem:[#allocation5 + $0x3c0] sm:$0xff]  ;;  %460 = vmatpush.msra.mxu1 %v295_v10  ;;  %438 = vmatpush.msra.mxu0 %v261_v11  ;;  %v298_v9 = vld [vmem:[#allocation5 + $0x1e8] sm:$0xff]  ;;  %p1028_p4 = pnand %p1027_p1, %p1176_p3 }
  0x3a   : > { %506 = vmatpush.msra.mxu3 %v359_v13  ;;  %v259_v16 = vld [vmem:[#allocation5 + $0xb0] sm:$0xff]  ;;  %484 = vmatpush.msra.mxu2 %v325_v12  ;;  %v257_v20 = vld [vmem:[#allocation5 + $0xa0] sm:$0xff]  ;;  %v262_v12 = vld [vmem:[#allocation5 + $0xc8] sm:$0xff]  ;;  %p1033_p2 = por %p1032_p9, %p1031_p11 }
  0x3b   : > { %v323_v17 = vld [vmem:[#allocation5 + $0x2b0] sm:$0xff]  ;;  %461 = vmatpush.msra.mxu1 %v293_v14  ;;  %v321_v21 = vld [vmem:[#allocation5 + $0x2a0] sm:$0xff]  ;;  %439 = vmatpush.msra.mxu0 %v259_v16  ;;  %v296_v13 = vld [vmem:[#allocation5 + $0x1d8] sm:$0xff]  ;;  %p1029_p8 = pneg %p1028_p4 }
  0x3c   : > { %v291_v18 = vld [vmem:[#allocation5 + $0x1b0] sm:$0xff]  ;;  %507 = vmatpush.msra.mxu3 %v357_v15  ;;  %485 = vmatpush.msra.mxu2 %v323_v17  ;;  %v289_v22 = vld [vmem:[#allocation5 + $0x1a0] sm:$0xff]  ;;  %v260_v16 = vld [vmem:[#allocation5 + $0xb8] sm:$0xff] }
  0x3d   : > { %v355_v19 = vld [vmem:[#allocation5 + $0x3b0] sm:$0xff]  ;;  %v353_v23 = vld [vmem:[#allocation5 + $0x3a0] sm:$0xff]  ;;  %462 = vmatpush.msra.mxu1 %v291_v18  ;;  %440 = vmatpush.msra.mxu0 %v257_v20  ;;  %v294_v17 = vld [vmem:[#allocation5 + $0x1c8] sm:$0xff]  ;;  %p1034_p10 = pnand %p1033_p2, %p1029_p8 }
  0x3e   : > { %508 = vmatpush.msra.mxu3 %v355_v19  ;;  %v255_v24 = vld [vmem:[#allocation5 + $0x90] sm:$0xff]  ;;  %486 = vmatpush.msra.mxu2 %v321_v21  ;;  %v253_v28 = vld [vmem:[#allocation5 + $0x80] sm:$0xff]  ;;  %v258_v20 = vld [vmem:[#allocation5 + $0xa8] sm:$0xff] }
  0x3f   : > { %v319_v25 = vld [vmem:[#allocation5 + $0x290] sm:$0xff]  ;;  %463 = vmatpush.msra.mxu1 %v289_v22  ;;  %v317_v29 = vld [vmem:[#allocation5 + $0x280] sm:$0xff]  ;;  %441 = vmatpush.msra.mxu0 %v255_v24  ;;  %v292_v21 = vld [vmem:[#allocation5 + $0x1b8] sm:$0xff] }
  0x40   : > { %v287_v26 = vld [vmem:[#allocation5 + $0x190] sm:$0xff]  ;;  %509 = vmatpush.msra.mxu3 %v353_v23  ;;  %487 = vmatpush.msra.mxu2 %v319_v25  ;;  %v285_v30 = vld [vmem:[#allocation5 + $0x180] sm:$0xff]  ;;  %v256_v24 = vld [vmem:[#allocation5 + $0x98] sm:$0xff] }
  0x41   : > { %v351_v27 = vld [vmem:[#allocation5 + $0x390] sm:$0xff]  ;;  %v349_v31 = vld [vmem:[#allocation5 + $0x380] sm:$0xff]  ;;  %464 = vmatpush.msra.mxu1 %v287_v26  ;;  %442 = vmatpush.msra.mxu0 %v253_v28  ;;  %v290_v25 = vld [vmem:[#allocation5 + $0x1a8] sm:$0xff] }
  0x42   : > { %510 = vmatpush.msra.mxu3 %v351_v27  ;;  %v251_v32 = vld [vmem:[#allocation5 + $0x70] sm:$0xff]  ;;  %488 = vmatpush.msra.mxu2 %v317_v29  ;;  %v249_v36 = vld [vmem:[#allocation5 + $0x60] sm:$0xff]  ;;  %v254_v28 = vld [vmem:[#allocation5 + $0x88] sm:$0xff] }
  0x43   : > { %v315_v33 = vld [vmem:[#allocation5 + $0x270] sm:$0xff]  ;;  %465 = vmatpush.msra.mxu1 %v285_v30  ;;  %v313_v37 = vld [vmem:[#allocation5 + $0x260] sm:$0xff]  ;;  %443 = vmatpush.msra.mxu0 %v251_v32  ;;  %v288_v29 = vld [vmem:[#allocation5 + $0x198] sm:$0xff] }
  0x44   : > { %v283_v34 = vld [vmem:[#allocation5 + $0x170] sm:$0xff]  ;;  %511 = vmatpush.msra.mxu3 %v349_v31  ;;  %489 = vmatpush.msra.mxu2 %v315_v33  ;;  %v281_v38 = vld [vmem:[#allocation5 + $0x160] sm:$0xff]  ;;  %v252_v32 = vld [vmem:[#allocation5 + $0x78] sm:$0xff] }
  0x45   : > { %v347_v35 = vld [vmem:[#allocation5 + $0x370] sm:$0xff]  ;;  %v345_v39 = vld [vmem:[#allocation5 + $0x360] sm:$0xff]  ;;  %466 = vmatpush.msra.mxu1 %v283_v34  ;;  %444 = vmatpush.msra.mxu0 %v249_v36  ;;  %v286_v33 = vld [vmem:[#allocation5 + $0x188] sm:$0xff] }
  0x46   : > { %512 = vmatpush.msra.mxu3 %v347_v35  ;;  %v247_v40 = vld [vmem:[#allocation5 + $0x50] sm:$0xff]  ;;  %490 = vmatpush.msra.mxu2 %v313_v37  ;;  %v245_v44 = vld [vmem:[#allocation5 + $0x40] sm:$0xff]  ;;  %v250_v36 = vld [vmem:[#allocation5 + $0x68] sm:$0xff] }
  0x47   : > { %v311_v41 = vld [vmem:[#allocation5 + $0x250] sm:$0xff]  ;;  %467 = vmatpush.msra.mxu1 %v281_v38  ;;  %v309_v45 = vld [vmem:[#allocation5 + $0x240] sm:$0xff]  ;;  %445 = vmatpush.msra.mxu0 %v247_v40  ;;  %v284_v37 = vld [vmem:[#allocation5 + $0x178] sm:$0xff] }
  0x48   : > { %v279_v42 = vld [vmem:[#allocation5 + $0x150] sm:$0xff]  ;;  %513 = vmatpush.msra.mxu3 %v345_v39  ;;  %491 = vmatpush.msra.mxu2 %v311_v41  ;;  %v277_v46 = vld [vmem:[#allocation5 + $0x140] sm:$0xff]  ;;  %v248_v40 = vld [vmem:[#allocation5 + $0x58] sm:$0xff] }
  0x49   : > { %v343_v43 = vld [vmem:[#allocation5 + $0x350] sm:$0xff]  ;;  %v341_v47 = vld [vmem:[#allocation5 + $0x340] sm:$0xff]  ;;  %468 = vmatpush.msra.mxu1 %v279_v42  ;;  %446 = vmatpush.msra.mxu0 %v245_v44  ;;  %v282_v41 = vld [vmem:[#allocation5 + $0x168] sm:$0xff] }
  0x4a   : > { %514 = vmatpush.msra.mxu3 %v343_v43  ;;  %v243_v48 = vld [vmem:[#allocation5 + $0x30] sm:$0xff]  ;;  %492 = vmatpush.msra.mxu2 %v309_v45  ;;  %v241_v52 = vld [vmem:[#allocation5 + $0x20] sm:$0xff]  ;;  %v246_v44 = vld [vmem:[#allocation5 + $0x48] sm:$0xff] }
  0x4b   : > { %v307_v49 = vld [vmem:[#allocation5 + $0x230] sm:$0xff]  ;;  %469 = vmatpush.msra.mxu1 %v277_v46  ;;  %v305_v53 = vld [vmem:[#allocation5 + $0x220] sm:$0xff]  ;;  %447 = vmatpush.msra.mxu0 %v243_v48  ;;  %v280_v45 = vld [vmem:[#allocation5 + $0x158] sm:$0xff] }
  0x4c   : > { %v275_v50 = vld [vmem:[#allocation5 + $0x130] sm:$0xff]  ;;  %515 = vmatpush.msra.mxu3 %v341_v47  ;;  %493 = vmatpush.msra.mxu2 %v307_v49  ;;  %v273_v54 = vld [vmem:[#allocation5 + $0x120] sm:$0xff]  ;;  %v244_v49 = vld [vmem:[#allocation5 + $0x38] sm:$0xff] }
  0x4d   : > { %v339_v51 = vld [vmem:[#allocation5 + $0x330] sm:$0xff]  ;;  %v337_v55 = vld [vmem:[#allocation5 + $0x320] sm:$0xff]  ;;  %470 = vmatpush.msra.mxu1 %v275_v50  ;;  %448 = vmatpush.msra.mxu0 %v241_v52  ;;  %v278_v50 = vld [vmem:[#allocation5 + $0x148] sm:$0xff] }
  0x4e   : > { %516 = vmatpush.msra.mxu3 %v339_v51  ;;  %v239_v56 = vld [vmem:[#allocation5 + $0x10] sm:$0xff]  ;;  %494 = vmatpush.msra.mxu2 %v305_v53  ;;  %v237_v60 = vld [vmem:[#allocation5] sm:$0xff]  ;;  %v1224_v51 = vld [vmem:[%s1210_s30 + $0x8] sm:$0xff] }
  0x4f   : > { %v303_v57 = vld [vmem:[#allocation5 + $0x210] sm:$0xff]  ;;  %471 = vmatpush.msra.mxu1 %v273_v54  ;;  %v301_v61 = vld [vmem:[#allocation5 + $0x200] sm:$0xff]  ;;  %449 = vmatpush.msra.mxu0 %v239_v56  ;;  %v242_v54 = vld [vmem:[#allocation5 + $0x28] sm:$0xff] }
  0x50   : > { %v271_v58 = vld [vmem:[#allocation5 + $0x110] sm:$0xff]  ;;  %517 = vmatpush.msra.mxu3 %v337_v55  ;;  %495 = vmatpush.msra.mxu2 %v303_v57  ;;  %v269_v0 = vld [vmem:[#allocation5 + $0x100] sm:$0xff]  ;;  %v276_v55 = vld [vmem:[#allocation5 + $0x138] sm:$0xff] }
  0x51   : > { %v335_v59 = vld [vmem:[#allocation5 + $0x310] sm:$0xff]  ;;  %472 = vmatpush.msra.mxu1 %v271_v58  ;;  %v333_v1 = vld [vmem:[#allocation5 + $0x300] sm:$0xff]  ;;  %450 = vmatpush.msra.mxu0 %v237_v60  ;;  %v240_v58 = vld [vmem:[#allocation5 + $0x18] sm:$0xff] }
  0x52   : > { %v395_v62 = vld [vmem:[#allocation5 + $0x4f0] sm:$0xff]  ;;  %518 = vmatpush.msra.mxu3 %v335_v59  ;;  %496 = vmatpush.msra.mxu2 %v301_v61  ;;  %v393_v2 = vld [vmem:[#allocation5 + $0x4e0] sm:$0xff]  ;;  %v274_v59 = vld [vmem:[#allocation5 + $0x128] sm:$0xff] }
  0x53   : > { %v427_v3 = vld [vmem:[#allocation5 + $0x5f0] sm:$0xff]  ;;  %527 = vmatpush.msrb.mxu0 %v395_v62  ;;  %473 = vmatpush.msra.mxu1 %v269_v0  ;;  %v425_v7 = vld [vmem:[#allocation5 + $0x5e0] sm:$0xff]  ;;  %v272_v0 = vld [vmem:[#allocation5 + $0x118] sm:$0xff] }
  0x54   : > { %573 = vmatpush.msrb.mxu2 %v268_v63  ;;  %519 = vmatpush.msra.mxu3 %v333_v1  ;;  %v391_v6 = vld [vmem:[#allocation5 + $0x4d0] sm:$0xff]  ;;  %v389_v10 = vld [vmem:[#allocation5 + $0x4c0] sm:$0xff]  ;;  %v238_v63 = vld [vmem:[#allocation5 + $0x8] sm:$0xff] }
  0x55   : > { %528 = vmatpush.msrb.mxu0 %v393_v2  ;;  %550 = vmatpush.msrb.mxu1 %v427_v3  ;;  %v423_v11 = vld [vmem:[#allocation5 + $0x5d0] sm:$0xff]  ;;  %v421_v15 = vld [vmem:[#allocation5 + $0x5c0] sm:$0xff]  ;;  %v332_v1 = vld [vmem:[#allocation5 + $0x2f8] sm:$0xff] }
  0x56   : > { %574 = vmatpush.msrb.mxu2 %v266_v4  ;;  %596 = vmatpush.msrb.mxu3 %v300_v5  ;;  %v387_v14 = vld [vmem:[#allocation5 + $0x4b0] sm:$0xff]  ;;  %v385_v18 = vld [vmem:[#allocation5 + $0x4a0] sm:$0xff]  ;;  %v396_v2 = vld [vmem:[#allocation5 + $0x4f8] sm:$0xff] }
  0x57   : > { %529 = vmatpush.msrb.mxu0 %v391_v6  ;;  %551 = vmatpush.msrb.mxu1 %v425_v7  ;;  %v419_v19 = vld [vmem:[#allocation5 + $0x5b0] sm:$0xff]  ;;  %v417_v23 = vld [vmem:[#allocation5 + $0x5a0] sm:$0xff]  ;;  %v1236_v4 = vld [vmem:[%s1210_s30 + $0x18] sm:$0xff] }
  0x58   : > { %575 = vmatpush.msrb.mxu2 %v264_v8  ;;  %597 = vmatpush.msrb.mxu3 %v298_v9  ;;  %v383_v22 = vld [vmem:[#allocation5 + $0x490] sm:$0xff]  ;;  %v381_v26 = vld [vmem:[#allocation5 + $0x480] sm:$0xff]  ;;  %v270_v6 = vld [vmem:[#allocation5 + $0x108] sm:$0xff] }
  0x59   : > { %530 = vmatpush.msrb.mxu0 %v389_v10  ;;  %552 = vmatpush.msrb.mxu1 %v423_v11  ;;  %v415_v27 = vld [vmem:[#allocation5 + $0x590] sm:$0xff]  ;;  %v413_v31 = vld [vmem:[#allocation5 + $0x580] sm:$0xff]  ;;  %v330_v7 = vld [vmem:[#allocation5 + $0x2e8] sm:$0xff] }
  0x5a   : > { %576 = vmatpush.msrb.mxu2 %v262_v12  ;;  %598 = vmatpush.msrb.mxu3 %v296_v13  ;;  %v379_v30 = vld [vmem:[#allocation5 + $0x470] sm:$0xff]  ;;  %v377_v34 = vld [vmem:[#allocation5 + $0x460] sm:$0xff]  ;;  %v364_v8 = vld [vmem:[#allocation5 + $0x3f8] sm:$0xff] }
  0x5b   : > { %531 = vmatpush.msrb.mxu0 %v387_v14  ;;  %553 = vmatpush.msrb.mxu1 %v421_v15  ;;  %v411_v35 = vld [vmem:[#allocation5 + $0x570] sm:$0xff]  ;;  %v409_v39 = vld [vmem:[#allocation5 + $0x560] sm:$0xff]  ;;  %v394_v9 = vld [vmem:[#allocation5 + $0x4e8] sm:$0xff] }
  0x5c   : > { %577 = vmatpush.msrb.mxu2 %v260_v16  ;;  %599 = vmatpush.msrb.mxu3 %v294_v17  ;;  %v375_v38 = vld [vmem:[#allocation5 + $0x450] sm:$0xff]  ;;  %v373_v42 = vld [vmem:[#allocation5 + $0x440] sm:$0xff]  ;;  %v428_v10 = vld [vmem:[#allocation5 + $0x5f8] sm:$0xff] }
  0x5d   : > { %532 = vmatpush.msrb.mxu0 %v385_v18  ;;  %554 = vmatpush.msrb.mxu1 %v419_v19  ;;  %v407_v43 = vld [vmem:[#allocation5 + $0x550] sm:$0xff]  ;;  %v1221_v46 = vld [vmem:[%s1210_s30] sm:$0xff]  ;;  %v1241_v11 = vld [vmem:[%s1210_s30 + $0x38] sm:$0xff] }
  0x5e   : > { %578 = vmatpush.msrb.mxu2 %v258_v20  ;;  %600 = vmatpush.msrb.mxu3 %v292_v21  ;;  %v405_v47 = vld [vmem:[#allocation5 + $0x540] sm:$0xff]  ;;  %v371_v48 = vld [vmem:[#allocation5 + $0x430] sm:$0xff]  ;;  %v328_v12 = vld [vmem:[#allocation5 + $0x2d8] sm:$0xff] }
  0x5f   : > { %533 = vmatpush.msrb.mxu0 %v383_v22  ;;  %555 = vmatpush.msrb.mxu1 %v417_v23  ;;  %v369_v52 = vld [vmem:[#allocation5 + $0x420] sm:$0xff]  ;;  %v403_v53 = vld [vmem:[#allocation5 + $0x530] sm:$0xff]  ;;  %v362_v13 = vld [vmem:[#allocation5 + $0x3e8] sm:$0xff] }
  0x60   : > { %579 = vmatpush.msrb.mxu2 %v256_v24  ;;  %601 = vmatpush.msrb.mxu3 %v290_v25  ;;  %v367_v56 = vld [vmem:[#allocation5 + $0x410] sm:$0xff]  ;;  %v401_v57 = vld [vmem:[#allocation5 + $0x520] sm:$0xff]  ;;  %v392_v14 = vld [vmem:[#allocation5 + $0x4d8] sm:$0xff] }
  0x61   : > { %534 = vmatpush.msrb.mxu0 %v381_v26  ;;  %556 = vmatpush.msrb.mxu1 %v415_v27  ;;  %v1229_v60 = vld [vmem:[%s1210_s30 + $0x10] sm:$0xff]  ;;  %v365_v61 = vld [vmem:[#allocation5 + $0x400] sm:$0xff]  ;;  %v426_v15 = vld [vmem:[#allocation5 + $0x5e8] sm:$0xff] }
  0x62   : > { %580 = vmatpush.msrb.mxu2 %v254_v28  ;;  %602 = vmatpush.msrb.mxu3 %v288_v29  ;;  %v399_v62 = vld [vmem:[#allocation5 + $0x510] sm:$0xff]  ;;  %v397_v5 = vld [vmem:[#allocation5 + $0x500] sm:$0xff]  ;;  %v326_v16 = vld [vmem:[#allocation5 + $0x2c8] sm:$0xff] }
  0x63   : > { %535 = vmatpush.msrb.mxu0 %v379_v30  ;;  %557 = vmatpush.msrb.mxu1 %v413_v31  ;;  %v1233_v3 = vld [vmem:[%s1210_s30 + $0x30] sm:$0xff]  ;;  %v360_v17 = vld [vmem:[#allocation5 + $0x3d8] sm:$0xff]  ;;  %v390_v18 = vld [vmem:[#allocation5 + $0x4c8] sm:$0xff] }
  0x64   : > { %581 = vmatpush.msrb.mxu2 %v252_v32  ;;  %603 = vmatpush.msrb.mxu3 %v286_v33  ;;  %v424_v19 = vld [vmem:[#allocation5 + $0x5d8] sm:$0xff]  ;;  %v1245_v20 = vld [vmem:[%s1210_s30 + $0x40] sm:$0xff]  ;;  %v358_v22 = vld [vmem:[#allocation5 + $0x3c8] sm:$0xff] }
  0x65   : > { %536 = vmatpush.msrb.mxu0 %v377_v34  ;;  %558 = vmatpush.msrb.mxu1 %v411_v35  ;;  %v324_v21 = vld [vmem:[#allocation5 + $0x2b8] sm:$0xff]  ;;  %v422_v24 = vld [vmem:[#allocation5 + $0x5c8] sm:$0xff]  ;;  %v1248_v25 = vld [vmem:[%s1210_s30 + $0x20] sm:$0xff] }
  0x66   : > { %582 = vmatpush.msrb.mxu2 %v250_v36  ;;  %604 = vmatpush.msrb.mxu3 %v284_v37  ;;  %v388_v23 = vld [vmem:[#allocation5 + $0x4b8] sm:$0xff]  ;;  %v1252_v26 = vld [vmem:[%s1210_s30 + $0x48] sm:$0xff] }
  0x67   : > { %537 = vmatpush.msrb.mxu0 %v375_v38  ;;  %559 = vmatpush.msrb.mxu1 %v409_v39  ;;  %v322_v27 = vld [vmem:[#allocation5 + $0x2a8] sm:$0xff]  ;;  %v356_v28 = vld [vmem:[#allocation5 + $0x3b8] sm:$0xff] }
  0x68   : > { %583 = vmatpush.msrb.mxu2 %v248_v40  ;;  %605 = vmatpush.msrb.mxu3 %v282_v41  ;;  %v386_v29 = vld [vmem:[#allocation5 + $0x4a8] sm:$0xff]  ;;  %v420_v30 = vld [vmem:[#allocation5 + $0x5b8] sm:$0xff] }
  0x69   : > { %538 = vmatpush.msrb.mxu0 %v373_v42  ;;  %560 = vmatpush.msrb.mxu1 %v407_v43  ;;  %v1256_v31 = vld [vmem:[%s1210_s30 + $0x28] sm:$0xff]  ;;  %v320_v32 = vld [vmem:[#allocation5 + $0x298] sm:$0xff] }
  0x6a   : > { %584 = vmatpush.msrb.mxu2 %v246_v44  ;;  %606 = vmatpush.msrb.mxu3 %v280_v45  ;;  %v354_v33 = vld [vmem:[#allocation5 + $0x3a8] sm:$0xff]  ;;  %v384_v34 = vld [vmem:[#allocation5 + $0x498] sm:$0xff]  ;;  %v1261_v44 = vld [vmem:[%s1210_s30 + $0x50] sm:$0xff] }
  0x6b   : > { %451 = vmatmul.f32.vlgmr.msra.gmra.mxu0 %v1221_v46  ;;  %561 = vmatpush.msrb.mxu1 %v405_v47  ;;  %v418_v35 = vld [vmem:[#allocation5 + $0x5a8] sm:$0xff]  ;;  %v352_v37 = vld [vmem:[#allocation5 + $0x398] sm:$0xff] }
  0x6c   : > { %539 = vmatpush.msrb.mxu0 %v371_v48  ;;  %585 = vmatpush.msrb.mxu2 %v244_v49  ;;  %v318_v36 = vld [vmem:[#allocation5 + $0x288] sm:$0xff]  ;;  %v416_v39 = vld [vmem:[#allocation5 + $0x598] sm:$0xff] }
  0x6d   : > { %607 = vmatpush.msrb.mxu3 %v278_v50  ;;  %474 = vmatmul.f32.vlgmr.msra.gmra.mxu1 %v1224_v51  ;;  %v382_v38 = vld [vmem:[#allocation5 + $0x488] sm:$0xff]  ;;  %v316_v40 = vld [vmem:[#allocation5 + $0x278] sm:$0xff] }
  0x6e   : > { %540 = vmatpush.msrb.mxu0 %v369_v52  ;;  %562 = vmatpush.msrb.mxu1 %v403_v53  ;;  %v350_v41 = vld [vmem:[#allocation5 + $0x388] sm:$0xff]  ;;  %v380_v42 = vld [vmem:[#allocation5 + $0x478] sm:$0xff] }
  0x6f   : > { %586 = vmatpush.msrb.mxu2 %v242_v54  ;;  %608 = vmatpush.msrb.mxu3 %v276_v55  ;;  %v414_v43 = vld [vmem:[#allocation5 + $0x588] sm:$0xff]  ;;  %v348_v47 = vld [vmem:[#allocation5 + $0x378] sm:$0xff] }
  0x70   : > { %541 = vmatpush.msrb.mxu0 %v367_v56  ;;  %563 = vmatpush.msrb.mxu1 %v401_v57  ;;  %v314_v45 = vld [vmem:[#allocation5 + $0x268] sm:$0xff]  ;;  %v412_v49 = vld [vmem:[#allocation5 + $0x578] sm:$0xff] }
  0x71   : > { %587 = vmatpush.msrb.mxu2 %v240_v58  ;;  %609 = vmatpush.msrb.mxu3 %v274_v59  ;;  %v378_v48 = vld [vmem:[#allocation5 + $0x468] sm:$0xff]  ;;  %v1266_v50 = vld [vmem:[%s1210_s30 + $0x58] sm:$0xff] }
  0x72   : > { %497 = vmatmul.f32.vlgmr.msra.gmra.mxu2 %v1229_v60  ;;  %542 = vmatpush.msrb.mxu0 %v365_v61  ;;  %v312_v52 = vld [vmem:[#allocation5 + $0x258] sm:$0xff]  ;;  %v346_v53 = vld [vmem:[#allocation5 + $0x368] sm:$0xff] }
  0x73   : > { %564 = vmatpush.msrb.mxu1 %v399_v62  ;;  %588 = vmatpush.msrb.mxu2 %v238_v63  ;;  %v410_v54 = vld [vmem:[#allocation5 + $0x568] sm:$0xff]  ;;  %v344_v56 = vld [vmem:[#allocation5 + $0x358] sm:$0xff] }
  0x74   : > { %610 = vmatpush.msrb.mxu3 %v272_v0  ;;  %619 = vmatpush.msra.mxu0 %v332_v1  ;;  %v310_v55 = vld [vmem:[#allocation5 + $0x248] sm:$0xff]  ;;  %v408_v58 = vld [vmem:[#allocation5 + $0x558] sm:$0xff] }
  0x75   : > { %665 = vmatpush.msra.mxu2 %v396_v2  ;;  %454 = vmatmul.f32.gmra.mxu0 %v1233_v3  ;;  %v374_v57 = vld [vmem:[#allocation5 + $0x448] sm:$0xff]  ;;  %v308_v59 = vld [vmem:[#allocation5 + $0x238] sm:$0xff] }
  0x76   : > { %520 = vmatmul.f32.vlgmr.msra.gmra.mxu3 %v1236_v4  ;;  %565 = vmatpush.msrb.mxu1 %v397_v5  ;;  %v372_v61 = vld [vmem:[#allocation5 + $0x438] sm:$0xff]  ;;  %v406_v62 = vld [vmem:[#allocation5 + $0x548] sm:$0xff] }
  0x77   : > { %611 = vmatpush.msrb.mxu3 %v270_v6  ;;  %620 = vmatpush.msra.mxu0 %v330_v7  ;;  %v306_v63 = vld [vmem:[#allocation5 + $0x228] sm:$0xff]  ;;  %v340_v0 = vld [vmem:[#allocation5 + $0x338] sm:$0xff] }
  0x78   : > { %642 = vmatpush.msra.mxu1 %v364_v8  ;;  %666 = vmatpush.msra.mxu2 %v394_v9  ;;  %v370_v1 = vld [vmem:[#allocation5 + $0x428] sm:$0xff]  ;;  %v404_v2 = vld [vmem:[#allocation5 + $0x538] sm:$0xff] }
  0x79   : > { %688 = vmatpush.msra.mxu3 %v428_v10  ;;  %477 = vmatmul.f32.gmra.mxu1 %v1241_v11  ;;  %v304_v5 = vld [vmem:[#allocation5 + $0x218] sm:$0xff]  ;;  %v338_v6 = vld [vmem:[#allocation5 + $0x328] sm:$0xff] }
  0x7a   : > { %621 = vmatpush.msra.mxu0 %v328_v12  ;;  %643 = vmatpush.msra.mxu1 %v362_v13  ;;  %v368_v7 = vld [vmem:[#allocation5 + $0x418] sm:$0xff]  ;;  %v402_v8 = vld [vmem:[#allocation5 + $0x528] sm:$0xff] }
  0x7b   : > { %667 = vmatpush.msra.mxu2 %v392_v14  ;;  %689 = vmatpush.msra.mxu3 %v426_v15  ;;  %v302_v9 = vld [vmem:[#allocation5 + $0x208] sm:$0xff]  ;;  %v336_v10 = vld [vmem:[#allocation5 + $0x318] sm:$0xff] }
  0x7c   : > { %622 = vmatpush.msra.mxu0 %v326_v16  ;;  %644 = vmatpush.msra.mxu1 %v360_v17  ;;  %v400_v12 = vld [vmem:[#allocation5 + $0x518] sm:$0xff]  ;;  %v334_v13 = vld [vmem:[#allocation5 + $0x308] sm:$0xff] }
  0x7d   : > { %668 = vmatpush.msra.mxu2 %v390_v18  ;;  %690 = vmatpush.msra.mxu3 %v424_v19  ;;  %v398_v14 = vld [vmem:[#allocation5 + $0x508] sm:$0xff] }
  0x7e   : > { %500 = vmatmul.f32.gmra.mxu2 %v1245_v20  ;;  %623 = vmatpush.msra.mxu0 %v324_v21 }
  0x7f   : > { %645 = vmatpush.msra.mxu1 %v358_v22  ;;  %669 = vmatpush.msra.mxu2 %v388_v23 }
  0x80   : > { %691 = vmatpush.msra.mxu3 %v422_v24  ;;  %543 = vmatmul.f32.vlgmr.msrb.gmra.mxu0 %v1248_v25 }
  0x81   : > { %523 = vmatmul.f32.gmra.mxu3 %v1252_v26  ;;  %624 = vmatpush.msra.mxu0 %v322_v27 }
  0x82   : > { %646 = vmatpush.msra.mxu1 %v356_v28  ;;  %670 = vmatpush.msra.mxu2 %v386_v29 }
  0x83   : > { %692 = vmatpush.msra.mxu3 %v420_v30  ;;  %566 = vmatmul.f32.vlgmr.msrb.gmra.mxu1 %v1256_v31 }
  0x84   : > { %625 = vmatpush.msra.mxu0 %v320_v32  ;;  %647 = vmatpush.msra.mxu1 %v354_v33 }
  0x85   : > { %671 = vmatpush.msra.mxu2 %v384_v34  ;;  %693 = vmatpush.msra.mxu3 %v418_v35 }
  0x86   : > { %626 = vmatpush.msra.mxu0 %v318_v36  ;;  %648 = vmatpush.msra.mxu1 %v352_v37 }
  0x87   : > { %672 = vmatpush.msra.mxu2 %v382_v38  ;;  %694 = vmatpush.msra.mxu3 %v416_v39 }
  0x88   : > { %589 = vmatmul.f32.vlgmr.msrb.gmra.mxu2 %v1221_v46  ;;  %627 = vmatpush.msra.mxu0 %v316_v40  ;;  %v376_v46 = vld [vmem:[#allocation5 + $0x458] sm:$0xff] }
  0x89   : > { %649 = vmatpush.msra.mxu1 %v350_v41  ;;  %673 = vmatpush.msra.mxu2 %v380_v42 }
  0x8a   : > { %695 = vmatpush.msra.mxu3 %v414_v43  ;;  %546 = vmatmul.f32.gmra.mxu0 %v1261_v44 }
  0x8b   : > { %612 = vmatmul.f32.vlgmr.msrb.gmra.mxu3 %v1224_v51  ;;  %628 = vmatpush.msra.mxu0 %v314_v45  ;;  %v342_v51 = vld [vmem:[#allocation5 + $0x348] sm:$0xff] }
  0x8c   : > { %650 = vmatpush.msra.mxu1 %v348_v47  ;;  %674 = vmatpush.msra.mxu2 %v378_v48 }
  0x8d   : > { %696 = vmatpush.msra.mxu3 %v412_v49  ;;  %569 = vmatmul.f32.gmra.mxu1 %v1266_v50 }
  0x8e   : > { %629 = vmatpush.msra.mxu0 %v312_v52  ;;  %651 = vmatpush.msra.mxu1 %v346_v53 }
  0x8f   : > { %675 = vmatpush.msra.mxu2 %v376_v46  ;;  %697 = vmatpush.msra.mxu3 %v410_v54 }
  0x90   : > { %630 = vmatpush.msra.mxu0 %v310_v55  ;;  %652 = vmatpush.msra.mxu1 %v344_v56 }
  0x91   : > { %676 = vmatpush.msra.mxu2 %v374_v57  ;;  %698 = vmatpush.msra.mxu3 %v408_v58 }
  0x92   : > { %592 = vmatmul.f32.gmra.mxu2 %v1233_v3  ;;  %631 = vmatpush.msra.mxu0 %v308_v59  ;;  %v366_v3 = vld [vmem:[#allocation5 + $0x408] sm:$0xff] }
  0x93   : > { %653 = vmatpush.msra.mxu1 %v342_v51  ;;  %677 = vmatpush.msra.mxu2 %v372_v61 }
  0x94   : > { %699 = vmatpush.msra.mxu3 %v406_v62  ;;  %632 = vmatpush.msra.mxu0 %v306_v63 }
  0x95   : > { %615 = vmatmul.f32.gmra.mxu3 %v1241_v11  ;;  %654 = vmatpush.msra.mxu1 %v340_v0  ;;  %v429_v11 = vld [vmem:[#allocation7] sm:$0x3] }
  0x96   : > { %678 = vmatpush.msra.mxu2 %v370_v1  ;;  %700 = vmatpush.msra.mxu3 %v404_v2  ;;  %v432_v40 = vperm.slane %v429_v11, 1 }
  0x97   : > { %633 = vmatpush.msra.mxu0 %v304_v5  ;;  %655 = vmatpush.msra.mxu1 %v338_v6 }
  0x98   : > { %679 = vmatpush.msra.mxu2 %v368_v7  ;;  %701 = vmatpush.msra.mxu3 %v402_v8 }
  0x99   : > { %634 = vmatpush.msra.mxu0 %v302_v9  ;;  %656 = vmatpush.msra.mxu1 %v336_v10 }
  0x9a   : > { %680 = vmatpush.msra.mxu2 %v366_v3  ;;  %702 = vmatpush.msra.mxu3 %v400_v12 }
  0x9b   : > { %635 = vmatmul.f32.vlgmr.msra.gmra.mxu0 %v1229_v60  ;;  %681 = vmatmul.f32.vlgmr.msra.gmra.mxu2 %v1248_v25  ;;  %v431_v60 = vperm.slane %v429_v11, 0 }
  0x9c   : > { %657 = vmatpush.msra.mxu1 %v334_v13  ;;  %703 = vmatpush.msra.mxu3 %v398_v14 }
  0x9d   : > { %658 = vmatmul.f32.vlgmr.msra.gmra.mxu1 %v1236_v4  ;;  %704 = vmatmul.f32.vlgmr.msra.gmra.mxu3 %v1256_v31 }
  0xa3   : > { %638 = vmatmul.f32.gmra.mxu0 %v1245_v20  ;;  %684 = vmatmul.f32.gmra.mxu2 %v1261_v44 }
  0xa5   : > { %661 = vmatmul.f32.gmra.mxu1 %v1252_v26  ;;  %707 = vmatmul.f32.gmra.mxu3 %v1266_v50 }
  0xe8   : > { %v452_v15 = vpop.f32.mrf.mxu0 }
  0xe9   : > { %v453_v17 = vadd.f32 %v452_v15, %v431_v60 }
  0xea   : > { %v475_v16 = vpop.f32.mrf.mxu1 }
  0xeb   : > { %v476_v18 = vadd.f32 %v475_v16, %v453_v17 }
  0xf2   : > { %v455_v19 = vpop.f32.mrf.mxu0 }
  0xf3   : > { %v456_v24 = vadd.f32 %v455_v19, %v431_v60 }
  0xf5   : > { %v498_v21 = vpop.f32.mrf.mxu2 }
  0xf6   : > { %v478_v4 = vpop.f32.mrf.mxu1  ;;  %v499_v22 = vadd.f32 %v498_v21, %v476_v18 }
  0xf7   : > { %v479_v27 = vadd.f32 %v478_v4, %v456_v24 }
  0xf9   : > { %v521_v23 = vpop.f32.mrf.mxu3 }
  0xfa   : > { %v522_v20 = vadd.f32 %v521_v23, %v499_v22 }
  0xfd   : > { %v544_v25 = vpop.f32.mrf.mxu0 }
  0xfe   : > { %v545_v26 = vadd.f32 %v544_v25, %v522_v20 }
 0x100   : > { %v567_v28 = vpop.f32.mrf.mxu1 }
 0x101   : > { %v568_v29 = vadd.f32 %v567_v28, %v545_v26  ;;  %v501_v30 = vpop.f32.mrf.mxu2 }
 0x102   : > { %v502_v31 = vadd.f32 %v501_v30, %v479_v27 }
 0x103   : > { %711 = vst [vmem:[%s1281_s23] sm:$0xff] %v568_v29 }
 0x104   : > { %v524_v32 = vpop.f32.mrf.mxu3 }
 0x105   : > { %v525_v33 = vadd.f32 %v524_v32, %v502_v31 }
 0x107   : > { %v547_v34 = vpop.f32.mrf.mxu0 }
 0x108   : > { %v548_v35 = vadd.f32 %v547_v34, %v525_v33 }
 0x10a   : > { %v570_v36 = vpop.f32.mrf.mxu1 }
 0x10b   : > { %v571_v37 = vadd.f32 %v570_v36, %v548_v35  ;;  %v590_v38 = vpop.f32.mrf.mxu2 }
 0x10c   : > { %v591_v41 = vadd.f32 %v590_v38, %v432_v40 }
 0x10d   : > { %713 = vst [vmem:[%s1281_s23 + $0x10] sm:$0xff] %v571_v37 }
 0x10e   : > { %v613_v39 = vpop.f32.mrf.mxu3 }
 0x10f   : > { %v614_v43 = vadd.f32 %v613_v39, %v591_v41 }
 0x115   : > { %v593_v42 = vpop.f32.mrf.mxu2 }
 0x116   : > { %v594_v49 = vadd.f32 %v593_v42, %v432_v40 }
 0x118   : > { %v616_v44 = vpop.f32.mrf.mxu3  ;;  %v636_v45 = vpop.f32.mrf.mxu0 }
 0x119   : > { %v637_v47 = vadd.f32 %v636_v45, %v614_v43  ;;  %v617_v53 = vadd.f32 %v616_v44, %v594_v49 }
 0x11a   : > { %v659_v48 = vpop.f32.mrf.mxu1 }
 0x11b   : > { %v660_v50 = vadd.f32 %v659_v48, %v637_v47 }
 0x11e   : > { %v682_v52 = vpop.f32.mrf.mxu2 }
 0x11f   : > { %v683_v46 = vadd.f32 %v682_v52, %v660_v50 }
 0x120   : > { %v639_v54 = vpop.f32.mrf.mxu0  ;;  %v705_v55 = vpop.f32.mrf.mxu3 }
 0x121   : > { %v640_v56 = vadd.f32 %v639_v54, %v617_v53  ;;  %v706_v57 = vadd.f32 %v705_v55, %v683_v46 }
 0x122   : > { %v662_v58 = vpop.f32.mrf.mxu1 }
 0x123   : > { %712 = vst [vmem:[%s1281_s23 + $0x8] sm:$0xff] %v706_v57  ;;  %v663_v59 = vadd.f32 %v662_v58, %v640_v56 }
 0x126   : > { %v685_v51 = vpop.f32.mrf.mxu2 }
 0x127   : > { %v686_v61 = vadd.f32 %v685_v51, %v663_v59 }
 0x128   : > { %v708_v62 = vpop.f32.mrf.mxu3 }
 0x129   : > { %v709_v63 = vadd.f32 %v708_v62, %v686_v61 }
 0x12b   : > { %714 = vst [vmem:[%s1281_s23 + $0x18] sm:$0xff] %v709_v63 }
 0x12c   : > { %1037 = shalt.err (!%p1034_p10)
}
 0x12d   : > { %s1088_s24 = smov 256   ;;  %s1089_s26 = smov 16  }
 0x12e   : > { %857 = dma.vmem_to_hbm [thread:$0]  (%p1176_p3), %s730_s4, 512, %s732_s5, %s716_s16, %s1088_s24, %s1088_s24, %s1089_s26  }
 0x12f PF: > { %s746_s30 = sand.u32 1, %s1068_s12   ;;  %p1330_p12 = scmp.ge.s32.totalorder %s1080_s15, 2 }
 0x130   : > { %s747_s18 = scalar_lea.sflag [#allocation4], %s746_s30 }
 0x131   : > { %p871_p13 = pnand %p1330_p12, %p1145_p6 }
 0x133   : > { %p872_p0 = pneg %p871_p13 }
 0x135   : > { %1063 = dma.done.wait (%p872_p0), %s747_s18, 512  }
 0x136   : > { %1065 = vsyncadd (%p872_p0), %s747_s18, 4294966784  ;;  %p17_p5 = scmp.ge.s32.totalorder %s1166_s6, 4   ;;  %s1331_s12 = smov %s1072_s13 }
 0x137   : > { %s1332_s13 = smov %s1076_s14  ;;  %s1333_s14 = smov %s1182_s10 }
 0x138   : > { %s1334_s15 = smov %s1166_s6  ;;  %19 = sbr.rel (!%p17_p5) target bundleno = 6 (0x6), region = 85 }
 0x13d   :  { %753 = vsyncpa [#allocation3], 1 }
 0x13e   :  { %755 = vsyncpa [#allocation3 + $0x1], 1 }
 0x13f   :  { %756 = vsyncpa [#allocation6], 1 }
 0x140   :  { %757 = vsyncpa [#allocation4], 1 }
 0x141   :  { %759 = vsyncpa [#allocation4 + $0x1], 1 }

</bundles_post_ra>
